<compile_context>
chip_gen: v6e
topology: v6e:2x2x1
jax: 0.10.0
libtpu: 0.0.40
codegen_flags: <defaults>
</compile_context>

<pallas_src>
import jax
import jax.numpy as jnp
from jax.experimental import pallas as pl
from jax.experimental.pallas import tpu as pltpu


def _norm_kernel(img_ref, mean_ref, inv_std_ref, out_ref):
    # img_ref / out_ref : (TM, HW) VMEM tile
    # mean_ref, inv_std_ref : (TM, 1) VMEM columns (per-row constants)
    out_ref[...] = (img_ref[...] - mean_ref[...]) * inv_std_ref[...]


def _choose_row_tile(rows, row_bytes, vmem_budget_bytes=16 * 1024 * 1024):
    """Largest row tile such that ~4 tile buffers (double-buffered in + out)
    fit inside `vmem_budget_bytes`, and that divides `rows` evenly."""
    max_rows = max(1, vmem_budget_bytes // (4 * max(1, row_bytes)))
    if rows <= max_rows:
        return rows
    tm = (max_rows // 8) * 8          # keep sublane-aligned row tiles
    while tm >= 8:
        if rows % tm == 0:
            return tm
        tm -= 8
    return rows                        # fall back: single big tile


def normalization(img, mean, std):
    """(img - mean[:,None,None]) / std[:,None,None] for NCHW img."""
    N, C, H, W = img.shape
    rows, hw = N * C, H * W

    # Free (bitcast) view of the contiguous NCHW tensor: one row per (n, c).
    img2 = img.reshape(rows, hw)

    mean = jnp.asarray(mean, dtype=img.dtype).reshape(-1)
    std = jnp.asarray(std, dtype=img.dtype).reshape(-1)
    inv_std = (1.0 / std).astype(img.dtype)

    # Row r of img2 corresponds to channel r % C -> tile channel constants.
    mean_rows = jnp.tile(mean, N).reshape(rows, 1)
    inv_std_rows = jnp.tile(inv_std, N).reshape(rows, 1)

    tm = _choose_row_tile(rows, hw * img.dtype.itemsize)
    grid = (rows // tm,)

    cost = pl.CostEstimate(
        flops=2 * img.size,                 # one sub + one mul per element
        transcendentals=0,
        bytes_accessed=2 * img.nbytes + mean_rows.nbytes + inv_std_rows.nbytes,
    )

    out2 = pl.pallas_call(
        _norm_kernel,
        out_shape=jax.ShapeDtypeStruct((rows, hw), img.dtype),
        grid=grid,
        in_specs=[
            pl.BlockSpec((tm, hw), lambda i: (i, 0)),   # image tile
            pl.BlockSpec((tm, 1), lambda i: (i, 0)),    # per-row mean
            pl.BlockSpec((tm, 1), lambda i: (i, 0)),    # per-row 1/std
        ],
        out_specs=pl.BlockSpec((tm, hw), lambda i: (i, 0)),
        compiler_params=pltpu.CompilerParams(
            dimension_semantics=("parallel",),          # megacore-shardable
            vmem_limit_bytes=32 * 1024 * 1024,          # explicit, v7x-safe
        ),
        cost_estimate=cost,
    )(img2, mean_rows, inv_std_rows)

    return out2.reshape(N, C, H, W)


if __name__ == "__main__":
    key = jax.random.PRNGKey(0)
    N, C, H, W = 2, 4, 16, 16

    # Deterministic "ImageNet-like" per-channel constants (module __init__ args).
    mean = jnp.array([0.485, 0.456, 0.406, 0.500], dtype=jnp.float32)
    std = jnp.array([0.229, 0.224, 0.225, 0.250], dtype=jnp.float32)

    img = jax.random.uniform(key, (N, C, H, W), dtype=jnp.float32)

    out = normalization(img, mean, std)
    out = jax.block_until_ready(out)

    ref = (img - mean[None, :, None, None]) / std[None, :, None, None]
    assert out.shape == img.shape and out.dtype == img.dtype
    assert jnp.allclose(out, ref, atol=1e-5, rtol=1e-5)

    print("KERNEL_OK")
</pallas_src>

<mosaic_0001>
module attributes {stable_mosaic.version = 11 : i64} {
  func.func @_norm_kernel(%arg0: i32, %arg1: memref<8x256xf32, #tpu.memory_space<vmem>>, %arg2: memref<8x1xf32, #tpu.memory_space<vmem>>, %arg3: memref<8x1xf32, #tpu.memory_space<vmem>>, %arg4: memref<8x256xf32, #tpu.memory_space<vmem>>) attributes {dimension_semantics = [#tpu.dimension_semantics<parallel>], iteration_bounds = array<i64: 1>, scalar_prefetch = 0 : i64, scratch_operands = 0 : i64, tpu.core_type = #tpu.core_type<tc>, window_params = [{transform_indices = @transform_0, window_bounds = array<i64: 8, 256>}, {transform_indices = @transform_1, window_bounds = array<i64: 8, 1>}, {transform_indices = @transform_2, window_bounds = array<i64: 8, 1>}, {transform_indices = @transform_3, window_bounds = array<i64: 8, 256>}]} {
    %c0 = arith.constant 0 : index
    %c0_0 = arith.constant 0 : index
    %0 = vector.load %arg1[%c0, %c0_0] : memref<8x256xf32, #tpu.memory_space<vmem>>, vector<8x256xf32>
    %c0_1 = arith.constant 0 : index
    %c0_2 = arith.constant 0 : index
    %1 = vector.load %arg2[%c0_1, %c0_2] : memref<8x1xf32, #tpu.memory_space<vmem>>, vector<8x1xf32>
    %2 = vector.broadcast %1 : vector<8x1xf32> to vector<8x256xf32>
    %3 = arith.subf %0, %2 : vector<8x256xf32>
    %c0_3 = arith.constant 0 : index
    %c0_4 = arith.constant 0 : index
    %4 = vector.load %arg3[%c0_3, %c0_4] : memref<8x1xf32, #tpu.memory_space<vmem>>, vector<8x1xf32>
    %5 = vector.broadcast %4 : vector<8x1xf32> to vector<8x256xf32>
    %6 = arith.mulf %3, %5 : vector<8x256xf32>
    %c0_5 = arith.constant 0 : index
    %c0_6 = arith.constant 0 : index
    %7 = vector.load %arg4[%c0_5, %c0_6] : memref<8x256xf32, #tpu.memory_space<vmem>>, vector<8x256xf32>
    tpu.vector_store %arg4[%c0_5, %c0_6], %6 {strides = array<i32>} : memref<8x256xf32, #tpu.memory_space<vmem>>, vector<8x256xf32>,
    return
  }
  func.func @transform_0(%arg0: i32) -> (i32, i32) {
    %c0_i32 = arith.constant 0 : i32
    %c0_i32_0 = arith.constant 0 : i32
    return %arg0, %c0_i32 : i32, i32
  }
  func.func @transform_1(%arg0: i32) -> (i32, i32) {
    %c0_i32 = arith.constant 0 : i32
    %c0_i32_0 = arith.constant 0 : i32
    return %arg0, %c0_i32 : i32, i32
  }
  func.func @transform_2(%arg0: i32) -> (i32, i32) {
    %c0_i32 = arith.constant 0 : i32
    %c0_i32_0 = arith.constant 0 : i32
    return %arg0, %c0_i32 : i32, i32
  }
  func.func @transform_3(%arg0: i32) -> (i32, i32) {
    %c0_i32 = arith.constant 0 : i32
    %c0_i32_0 = arith.constant 0 : i32
    return %arg0, %c0_i32 : i32, i32
  }
}

</mosaic_0001>

<bundles_post_ra>
// kernel: tpu_custom_call.1
= control target key start
LH: loop header
LB: loop body
LE: loop exit
PB: predicated region body
PF: predicated region fallthrough
CT: control target
= control target key end

     0   :  { %v74_v1 = vmov 0   ;;  %s111_s0 = inlined_call_operand.vmem [shape: f32[8,256], index: 0, kind: input, shape index: {}]   ;;  %s112_s1 = inlined_call_operand.vmem [shape: f32[8,1], index: 1, kind: input, shape index: {}]   ;;  %s113_s2 = inlined_call_operand.vmem [shape: f32[8,1], index: 2, kind: input, shape index: {}]   ;;  %s114_s3 = inlined_call_operand.hbm [shape: f32[8,256], index: 3, kind: output, shape index: {}]  }
   0x1   :  { %v17_v0 = vld [vmem:[%s112_s1] sm:$0xff]  ;;  %51 = vset.pattern.permute.xlu0 %v74_v1 }
   0x2   :  { %8 = vsyncpa [#allocation3], 0  ;;  %20 = vperm.xlu0 %51, %v17_v0   ;;  %v25_v2 = vld [vmem:[%s113_s2] sm:$0xff]  ;;  %v16_v5 = vld [vmem:[%s111_s0 + $0x8] sm:$0xff]  ;;  %s75_s20 = smov [#allocation2]  }
   0x3   :  { %v15_v4 = vld [vmem:[%s111_s0] sm:$0xff]  ;;  %s41_s1 = sshll.u32 %s75_s20, 4  ;;  %s42_s1 = int_to_ptr.vmem [resolvable:$true] %s41_s1 }
   0x4   :  { %s52_s2 = scalar_lea.vmem %s42_s1, 256  ;;  %p57_p1 = scmp.lt.s32.totalorder %s42_s1, %s42_s1 }
   0x5   :  { %p53_p0 = scmp.ne.s32.totalorder %s42_s1, %s52_s2  ;;  %p58_p2 = scmp.lt.s32.totalorder %s52_s2, %s52_s2 }
   0x6   :  { %28 = vperm.xlu0 %51, %v25_v2  }
   0x7   :  { %p59_p3 = por %p58_p2, %p57_p1 }
   0x9   :  { %p60_p4 = pnand %p59_p3, %p53_p0 }
  0x7d   :  { %v21_v3 = vpop.permute.xlu0 %20 }
  0x7e   :  { %v23_v6 = vsub.f32 %v15_v4, %v21_v3  ;;  %v24_v7 = vsub.f32 %v16_v5, %v21_v3 }
  0x81   :  { %v29_v8 = vpop.permute.xlu0 %28 }
  0x82   :  { %v31_v9 = vmul.f32 %v29_v8, %v23_v6  ;;  %v32_v10 = vmul.f32 %v29_v8, %v24_v7 }
  0x84   :  { %33 = vst [vmem:[#allocation2] sm:$0xff] %v31_v9  ;;  %34 = vst [vmem:[#allocation2 + $0x8] sm:$0xff] %v32_v10 }
  0x85   :  { %63 = shalt.err (!%p60_p4)
}
  0x86   :  { %44 = dma.vmem_to_hbm [thread:$0]  %s42_s1, 256, %s114_s3, [#allocation3]  }
  0x87   :  { %72 = dma.done.wait [#allocation3], 256  }
  0x88   :  { %73 = vsyncadd [#allocation3], 4294967040 }
  0x89   :  { %48 = vsyncpa [#allocation3], 1 }

</bundles_post_ra>
